<compile_context>
chip_gen: v6e
topology: v6e:2x2x1
jax: 0.10.0
libtpu: 0.0.40
codegen_flags: <defaults>
</compile_context>

<pallas_src>
import functools

import jax
import jax.numpy as jnp
from jax.experimental import pallas as pl
from jax.experimental.pallas import tpu as pltpu


def _patch_embed_kernel(p_ref, w_ref, pos_ref, o_ref):
    # p_ref:   (TM, Kp)  bf16 row-tile of flattened patches (K zero-padded)
    # w_ref:   (Kp, E)   bf16 flattened conv weight (resident across steps)
    # pos_ref: (TM, E)   positional embedding + folded conv bias (model dtype)
    # o_ref:   (TM, E)   output embeddings row-tile (lane-dense 2-D store)
    acc = jnp.dot(p_ref[...], w_ref[...],
                  preferred_element_type=jnp.float32)      # MXU bf16 -> f32
    o_ref[...] = (acc + pos_ref[...].astype(jnp.float32)).astype(o_ref.dtype)


def _round_up(x, m):
    return ((x + m - 1) // m) * m


def siglip_vision_embeddings(pixel_values, conv_weight, conv_bias,
                             pos_embedding, patch_size, row_tile=None,
                             single_buffer_weight=True):
    """pixel_values: (B, C, H, W) NCHW, like the PyTorch module.
       conv_weight:  (E, C, P, P), conv_bias: (E,), pos_embedding: (N, E).
       Returns (B, N, E) embeddings in pixel_values.dtype."""
    B, C, H, W = pixel_values.shape
    P = patch_size
    E = conv_weight.shape[0]
    Gh, Gw = H // P, W // P
    N = Gh * Gw
    K = C * P * P
    Kp = _round_up(K, 128)               # lane-align the contraction dim
    out_dtype = pixel_values.dtype

    # ---- glue: im2col for a stride==kernel_size conv ------------------------
    # (B, C, Gh, P, Gw, P) -> (B, Gh, Gw, C, P, P) -> (B, N, K), bf16, pad K->Kp.
    # allow_input_fusion below lets XLA fuse this producer chain into the
    # Pallas input DMA so `patches` is not materialized in HBM.
    # TODO(synk): for a fully fused path, grid over (B, patch-row tiles) with a
    # (None, C, P, W) BlockSpec on pixel_values and do the (C,P,Gw,P)->(Gw,K)
    # rearrange in-kernel (XLU slot is idle here), removing the wrapper im2col
    # entirely.
    patches = pixel_values.reshape(B, C, Gh, P, Gw, P)
    patches = patches.transpose(0, 2, 4, 1, 3, 5).reshape(B, N, K)
    patches = patches.astype(jnp.bfloat16)
    if Kp != K:
        patches = jnp.pad(patches, ((0, 0), (0, 0), (0, Kp - K)))

    # Conv weight (E, C, P, P) -> (K, E) bf16, zero-padded along K to Kp.
    w_flat = conv_weight.reshape(E, K).T.astype(jnp.bfloat16)
    if Kp != K:
        w_flat = jnp.pad(w_flat, ((0, Kp - K), (0, 0)))

    # Fold the conv bias into the positional embedding (in f32), then keep the
    # table in the stream dtype; the kernel upcasts for the add.
    pos_plus_bias = (pos_embedding.astype(jnp.float32)
                     + conv_bias.astype(jnp.float32)[None, :]).astype(out_dtype)

    # ---- row tiling over the patch dimension --------------------------------
    if row_tile is None:
        TM = N if N <= 512 else 512
        if B == 1 and TM == N and N > 8:
            # Split into >= 2 tiles so both v7x TensorCores get work at B == 1.
            TM = _round_up(pl.cdiv(N, 2), 8)
    else:
        TM = row_tile
    NT = pl.cdiv(N, TM)

    w_spec_kwargs = {}
    if single_buffer_weight:
        # Constant index_map -> second pipeline buffer is never used; request
        # a single buffer to halve the resident-weight VMEM footprint.
        w_spec_kwargs["pipeline_mode"] = pl.Buffered(1)

    grid_spec = pltpu.PrefetchScalarGridSpec(
        num_scalar_prefetch=0,
        # Batch innermost so the pos(+bias) block index is constant across
        # consecutive steps (Pallas skips the re-DMA).
        grid=(NT, B),
        in_specs=[
            # patches: one (TM, Kp) row-tile per step, batch dim squeezed.
            pl.BlockSpec((None, TM, Kp), lambda t, b: (b, t, 0)),
            # weight: constant index_map -> stays resident in VMEM.
            pl.BlockSpec((Kp, E), lambda t, b: (0, 0), **w_spec_kwargs),
            # pos(+bias): row-tile matching the output rows.
            pl.BlockSpec((TM, E), lambda t, b: (t, 0)),
        ],
        out_specs=pl.BlockSpec((None, TM, E), lambda t, b: (b, t, 0)),
    )

    out_itemsize = jnp.dtype(out_dtype).itemsize
    cost = pl.CostEstimate(
        flops=2 * B * N * Kp * E,
        transcendentals=0,
        bytes_accessed=(B * N * Kp * 2            # patches (bf16)
                        + Kp * E * 2              # weight (bf16)
                        + N * E * out_itemsize    # pos(+bias)
                        + B * N * E * out_itemsize))  # output

    # Per-step working set (double-buffered streams + weight), with headroom.
    # TODO(synk): E < 128 configs emit masked vst stores on the output; real
    # SigLIP (E=768/1152) is lane-dense already.
    working_set = (2 * TM * Kp * 2
                   + 2 * Kp * E * 2
                   + 2 * TM * E * out_itemsize
                   + 2 * TM * E * out_itemsize)
    vmem_limit = int(min(48 * 1024 * 1024,
                         max(32 * 1024 * 1024, 2 * working_set + (4 << 20))))

    return pl.pallas_call(
        _patch_embed_kernel,
        out_shape=jax.ShapeDtypeStruct((B, N, E), out_dtype),
        grid_spec=grid_spec,
        cost_estimate=cost,
        compiler_params=pltpu.CompilerParams(
            dimension_semantics=("parallel", "parallel"),
            allow_input_fusion=[True, False, False],
            vmem_limit_bytes=vmem_limit),
    )(patches, w_flat, pos_plus_bias)


if __name__ == "__main__":
    # Small config consistent with the module: C=3, image 32x32, patch 4 ->
    # Gh=Gw=8, N=64 patches, hidden_size (embed_dim) = 32.  row_tile=16 so the
    # test exercises the multi-tile pipelined path (grid = (4, 2)).
    batch = 2
    num_channels = 3
    image_size = 32
    patch_size = 4
    embed_dim = 32
    num_patches = (image_size // patch_size) ** 2
    K = num_channels * patch_size * patch_size

    key = jax.random.PRNGKey(0)
    k_x, k_w, k_b, k_pos = jax.random.split(key, 4)

    pixel_values = jax.random.normal(
        k_x, (batch, num_channels, image_size, image_size), dtype=jnp.float32)
    conv_weight = jax.random.normal(
        k_w, (embed_dim, num_channels, patch_size, patch_size),
        dtype=jnp.float32) * 0.02
    conv_bias = jax.random.normal(k_b, (embed_dim,), dtype=jnp.float32) * 0.02
    pos_embedding = jax.random.normal(
        k_pos, (num_patches, embed_dim), dtype=jnp.float32) * 0.02

    def run(single_buffer_weight):
        fn = jax.jit(functools.partial(
            siglip_vision_embeddings, patch_size=patch_size, row_tile=16,
            single_buffer_weight=single_buffer_weight))
        return jax.block_until_ready(
            fn(pixel_values, conv_weight, conv_bias, pos_embedding))

    try:
        out = run(True)
    except Exception:
        # Fallback if this JAX/Mosaic build rejects Buffered(1) block specs in
        # the top-level pallas_call pipeline.
        out = run(False)

    # Pure-JAX f32 reference (same math as the PyTorch forward).
    Gh = Gw = image_size // patch_size
    patches_ref = pixel_values.reshape(
        batch, num_channels, Gh, patch_size, Gw, patch_size)
    patches_ref = patches_ref.transpose(0, 2, 4, 1, 3, 5).reshape(
        batch, num_patches, K)
    ref = jnp.einsum("bnk,ke->bne", patches_ref,
                     conv_weight.reshape(embed_dim, K).T,
                     precision=jax.lax.Precision.HIGHEST)
    ref = ref + conv_bias[None, None, :] + pos_embedding[None, :, :]

    assert out.shape == (batch, num_patches, embed_dim)
    # bf16 MXU operands -> bf16-level tolerance vs. the f32 reference.
    assert jnp.allclose(out, ref, atol=2e-2, rtol=2e-2), float(
        jnp.max(jnp.abs(out - ref)))
    print("KERNEL_OK")
</pallas_src>

<mosaic_0001>
module attributes {stable_mosaic.version = 11 : i64} {
  func.func @_patch_embed_kernel(%arg0: i32, %arg1: i32, %arg2: memref<1x16x128xbf16, #tpu.memory_space<vmem>>, %arg3: memref<128x32xbf16, #tpu.memory_space<vmem>>, %arg4: memref<16x32xf32, #tpu.memory_space<vmem>>, %arg5: memref<1x16x32xf32, #tpu.memory_space<vmem>>) attributes {dimension_semantics = [#tpu.dimension_semantics<parallel>, #tpu.dimension_semantics<parallel>], iteration_bounds = array<i64: 4, 2>, scalar_prefetch = 0 : i64, scratch_operands = 0 : i64, tpu.core_type = #tpu.core_type<tc>, window_params = [{transform_indices = @transform_0, window_bounds = array<i64: 1, 16, 128>}, {pipeline_mode = #tpu.pipeline_mode<synchronous>, transform_indices = @transform_1, window_bounds = array<i64: 128, 32>}, {transform_indices = @transform_2, window_bounds = array<i64: 16, 32>}, {transform_indices = @transform_3, window_bounds = array<i64: 1, 16, 32>}]} {
    %c0 = arith.constant 0 : index
    %c0_0 = arith.constant 0 : index
    %c0_1 = arith.constant 0 : index
    %0 = vector.load %arg2[%c0, %c0_0, %c0_1] : memref<1x16x128xbf16, #tpu.memory_space<vmem>>, vector<1x16x128xbf16>
    %1 = vector.shape_cast %0 : vector<1x16x128xbf16> to vector<16x128xbf16>
    %c0_2 = arith.constant 0 : index
    %c0_3 = arith.constant 0 : index
    %2 = vector.load %arg3[%c0_2, %c0_3] : memref<128x32xbf16, #tpu.memory_space<vmem>>, vector<128x32xbf16>
    %cst = arith.constant dense<0.000000e+00> : vector<16x32xf32>
    %3 = tpu.matmul %1, %2, %cst {dimension_numbers = #tpu.dot_dimension_numbers<[1], [0], [0], [1], [0, 0, 1, 1], [], []>} : vector<16x128xbf16>, vector<128x32xbf16>, vector<16x32xf32> -> vector<16x32xf32>
    %c0_4 = arith.constant 0 : index
    %c0_5 = arith.constant 0 : index
    %4 = vector.load %arg4[%c0_4, %c0_5] : memref<16x32xf32, #tpu.memory_space<vmem>>, vector<16x32xf32>
    %5 = arith.addf %3, %4 : vector<16x32xf32>
    %c0_6 = arith.constant 0 : index
    %c0_7 = arith.constant 0 : index
    %c0_8 = arith.constant 0 : index
    %6 = vector.load %arg5[%c0_6, %c0_7, %c0_8] : memref<1x16x32xf32, #tpu.memory_space<vmem>>, vector<1x16x32xf32>
    %7 = vector.shape_cast %6 : vector<1x16x32xf32> to vector<16x32xf32>
    %8 = vector.shape_cast %5 : vector<16x32xf32> to vector<1x16x32xf32>
    tpu.vector_store %arg5[%c0_6, %c0_7, %c0_8], %8 {strides = array<i32>} : memref<1x16x32xf32, #tpu.memory_space<vmem>>, vector<1x16x32xf32>,
    return
  }
  func.func @transform_0(%arg0: i32, %arg1: i32) -> (i32, i32, i32) {
    %c0_i32 = arith.constant 0 : i32
    %c0_i32_0 = arith.constant 0 : i32
    return %arg1, %arg0, %c0_i32 : i32, i32, i32
  }
  func.func @transform_1(%arg0: i32, %arg1: i32) -> (i32, i32) {
    %c0_i32 = arith.constant 0 : i32
    %c0_i32_0 = arith.constant 0 : i32
    %c0_i32_1 = arith.constant 0 : i32
    return %c0_i32, %c0_i32_0 : i32, i32
  }
  func.func @transform_2(%arg0: i32, %arg1: i32) -> (i32, i32) {
    %c0_i32 = arith.constant 0 : i32
    %c0_i32_0 = arith.constant 0 : i32
    return %arg0, %c0_i32 : i32, i32
  }
  func.func @transform_3(%arg0: i32, %arg1: i32) -> (i32, i32, i32) {
    %c0_i32 = arith.constant 0 : i32
    %c0_i32_0 = arith.constant 0 : i32
    return %arg1, %arg0, %c0_i32 : i32, i32, i32
  }
}

module attributes {stable_mosaic.version = 11 : i64} {
  func.func @_patch_embed_kernel(%arg0: i32, %arg1: i32, %arg2: memref<1x16x128xbf16, #tpu.memory_space<vmem>>, %arg3: memref<128x32xbf16, #tpu.memory_space<vmem>>, %arg4: memref<16x32xf32, #tpu.memory_space<vmem>>, %arg5: memref<1x16x32xf32, #tpu.memory_space<vmem>>) attributes {dimension_semantics = [#tpu.dimension_semantics<parallel>, #tpu.dimension_semantics<parallel>], iteration_bounds = array<i64: 4, 2>, scalar_prefetch = 0 : i64, scratch_operands = 0 : i64, tpu.core_type = #tpu.core_type<tc>, window_params = [{transform_indices = @transform_0, window_bounds = array<i64: 1, 16, 128>}, {pipeline_mode = #tpu.pipeline_mode<synchronous>, transform_indices = @transform_1, window_bounds = array<i64: 128, 32>}, {transform_indices = @transform_2, window_bounds = array<i64: 16, 32>}, {transform_indices = @transform_3, window_bounds = array<i64: 1, 16, 32>}]} {
    %c0 = arith.constant 0 : index
    %c0_0 = arith.constant 0 : index
    %c0_1 = arith.constant 0 : index
    %0 = vector.load %arg2[%c0, %c0_0, %c0_1] : memref<1x16x128xbf16, #tpu.memory_space<vmem>>, vector<1x16x128xbf16>
    %1 = vector.shape_cast %0 : vector<1x16x128xbf16> to vector<16x128xbf16>
    %c0_2 = arith.constant 0 : index
    %c0_3 = arith.constant 0 : index
    %2 = vector.load %arg3[%c0_2, %c0_3] : memref<128x32xbf16, #tpu.memory_space<vmem>>, vector<128x32xbf16>
    %cst = arith.constant dense<0.000000e+00> : vector<16x32xf32>
    %3 = tpu.matmul %1, %2, %cst {dimension_numbers = #tpu.dot_dimension_numbers<[1], [0], [0], [1], [0, 0, 1, 1], [], []>} : vector<16x128xbf16>, vector<128x32xbf16>, vector<16x32xf32> -> vector<16x32xf32>
    %c0_4 = arith.constant 0 : index
    %c0_5 = arith.constant 0 : index
    %4 = vector.load %arg4[%c0_4, %c0_5] : memref<16x32xf32, #tpu.memory_space<vmem>>, vector<16x32xf32>
    %5 = arith.addf %3, %4 : vector<16x32xf32>
    %c0_6 = arith.constant 0 : index
    %c0_7 = arith.constant 0 : index
    %c0_8 = arith.constant 0 : index
    %6 = vector.load %arg5[%c0_6, %c0_7, %c0_8] : memref<1x16x32xf32, #tpu.memory_space<vmem>>, vector<1x16x32xf32>
    %7 = vector.shape_cast %6 : vector<1x16x32xf32> to vector<16x32xf32>
    %8 = vector.shape_cast %5 : vector<16x32xf32> to vector<1x16x32xf32>
    tpu.vector_store %arg5[%c0_6, %c0_7, %c0_8], %8 {strides = array<i32>} : memref<1x16x32xf32, #tpu.memory_space<vmem>>, vector<1x16x32xf32>,
    return
  }
  func.func @transform_0(%arg0: i32, %arg1: i32) -> (i32, i32, i32) {
    %c0_i32 = arith.constant 0 : i32
    %c0_i32_0 = arith.constant 0 : i32
    return %arg1, %arg0, %c0_i32 : i32, i32, i32
  }
  func.func @transform_1(%arg0: i32, %arg1: i32) -> (i32, i32) {
    %c0_i32 = arith.constant 0 : i32
    %c0_i32_0 = arith.constant 0 : i32
    %c0_i32_1 = arith.constant 0 : i32
    return %c0_i32, %c0_i32_0 : i32, i32
  }
  func.func @transform_2(%arg0: i32, %arg1: i32) -> (i32, i32) {
    %c0_i32 = arith.constant 0 : i32
    %c0_i32_0 = arith.constant 0 : i32
    return %arg0, %c0_i32 : i32, i32
  }
  func.func @transform_3(%arg0: i32, %arg1: i32) -> (i32, i32, i32) {
    %c0_i32 = arith.constant 0 : i32
    %c0_i32_0 = arith.constant 0 : i32
    return %arg1, %arg0, %c0_i32 : i32, i32, i32
  }
}

</mosaic_0001>

<bundles_post_ra>
// kernel: siglip_vision_embeddings.2
= control target key start
LH: loop header
LB: loop body
LE: loop exit
PB: predicated region body
PF: predicated region fallthrough
CT: control target
= control target key end

     0   :  { %s680_s17 = smov 0   ;;  %s682_s18 = smov 0   ;;  %s771_s0 = inlined_call_operand.vmem [shape: bf16[128,32], index: 0, kind: input, shape index: {}]   ;;  %s772_s1 = inlined_call_operand.vmem [shape: f32[64,32], index: 1, kind: input, shape index: {}]   ;;  %s773_s2 = inlined_call_operand.vmem [shape: bf16[2,64,48], index: 2, kind: input, shape index: {}]   ;;  %s774_s3 = inlined_call_operand.<no memory space> [shape: bf16[], index: 3, kind: input, shape index: {}]   ;;  %s775_s4 = inlined_call_operand.vmem [shape: f32[2,64,32], index: 4, kind: output, shape index: {}]  }
   0x1   :  { %v9_v0 = vstv %s774_s3  ;;  %s684_s19 = smov 0   ;;  %s686_s20 = smov 0  }
   0x2   :  { %v678_v1 = vunpack.i.l.bf16 %v9_v0  ;;  %s688_s21 = smov 0  }
   0x3 LB: > { %s28_s3 = sadd.s32 1, %s638_s19  ;;  %s31_s22 = sadd.s32 1, %s642_s20  ;;  %s646_s21 = sphi %s688_s21, %s19_s21   ;;  %s642_s20 = sphi %s686_s20, %s779_s20   ;;  %s638_s19 = sphi %s684_s19, %s778_s19   ;;  %s634_s18 = sphi %s682_s18, %s777_s18   ;;  %s630_s17 = sphi %s680_s17, %s776_s17  }
   0x4   : > { %p29_p0 = scmp.ge.s32.totalorder %s28_s3, 2  ;;  %p507_p1 = scmp.ge.s32.totalorder %s646_s21, 1 }
   0x5   : > { %p175_p2 = scmp.lt.s32.totalorder %s646_s21, 9 }
   0x6   : > { %s781_s3 = smov (%p29_p0, %s28_s3), 0  ;;  %s783_s22 = smov (!%p29_p0, %s31_s22), %s642_s20 }
   0x7   : > { %p176_p3 = pnand %p507_p1, %p175_p2  ;;  %p33_p4 = scmp.ge.s32.totalorder %s783_s22, 4 }
   0x9   : > { %s785_s22 = smov (%p33_p4, %s783_s22), 0  ;;  %179 = sbr.rel (%p176_p3) target bundleno = 247 (0xf7), region = 32 }
   0xe   : > { %v599_v2 = vld [vmem:[%s771_s0 + $0x38] sm:$0xff]   ;;  %v648_v3 = vmov 0.0   ;;  %v600_v4 = vld [vmem:[%s771_s0 + $0x30] sm:$0xff]   ;;  %vm649_vm0 = vmmov 0   ;;  %s508_s27 = sshll.u32 %s634_s18, 1  ;;  %p213_p5 = scmp.lt.s32.totalorder %s630_s17, 1  ;;  %v250_v5 = vlaneseq }
   0xf   : > { %537 = vmatprep.subr.bf16.mxu0 %v648_v3  ;;  %553 = vmatprep.mubr.msk.bf16.mxu0 %vm649_vm0, %v648_v3  ;;  %p215_p6 = scmp.lt.s32.totalorder %s508_s27, 7  ;;  %v601_v6 = vld [vmem:[%s771_s0 + $0x28] sm:$0xff]   ;;  %v602_v8 = vld [vmem:[%s771_s0 + $0x20] sm:$0xff]   ;;  %v603_v12 = vld [vmem:[%s771_s0 + $0x18] sm:$0xff]   ;;  %vm398_vm2 = vcmask 261120  }
  0x10   : > { %538 = vmatpush3.bf16.msra.mxu0 %v599_v2  ;;  %s787_s17 = smov (!%p213_p5, %s630_s17), 1  ;;  %v251_v7 = vand.u32 127, %v250_v5  ;;  %v604_v17 = vld [vmem:[%s771_s0 + $0x10] sm:$0xff]   ;;  %v605_v18 = vld [vmem:[%s771_s0 + $0x8] sm:$0xff]   ;;  %v606_v19 = vld [vmem:[%s771_s0] sm:$0xff]  }
  0x11   : > { %539 = vmatprep.subr.bf16.mxu0 %v648_v3  ;;  %s789_s27 = smov (!%p215_p6, %s508_s27), 7  ;;  %s509_s30 = sshll.u32 %s787_s17, 3 }
  0x12   : > { %s725_s5 = sadd.s32 %s509_s30, %s789_s27  ;;  %vm253_vm1 = vcmp.lt.s32.totalorder %v251_v7, 48  ;;  %s512_s24 = sshll.u32 %s789_s27, 3 }
  0x13   : > { %s510_s6 = sshll.u32 %s725_s5, 2  ;;  %s226_s28 = scalar_lea.vmem %s772_s1, %s512_s24 }
  0x14   : > { %540 = vmatpush3.bf16.msra.mxu0 %v600_v4  ;;  %s220_s11 = scalar_lea.vmem %s773_s2, %s510_s6  ;;  %s515_s29 = sshll.u32 %s725_s5, 3  ;;  %v301_v21 = vld [vmem:[%s226_s28] sm:$0xff]  ;;  %v302_v25 = vld [vmem:[%s226_s28 + $0x8] sm:$0xff] }
  0x15   : > { %541 = vmatprep.subr.bf16.mxu0 %v648_v3  ;;  %v247_v9 = vld [vmem:[%s220_s11] sm:$0xff]   ;;  %s236_s7 = scalar_lea.vmem %s775_s4, %s515_s29 }
  0x16   : > { %v248_v10 = vunpack.c.l.bf16 %v247_v9  ;;  %v270_v11 = vunpack.c.h.bf16 %v247_v9 }
  0x18   : > { %542 = vmatpush3.bf16.msra.mxu0 %v601_v6  ;;  %v254_v13 = vsel %vm253_vm1, %v248_v10, %v678_v1  ;;  %v276_v14 = vsel %vm253_vm1, %v270_v11, %v678_v1 }
  0x19   : > { %543 = vmatprep.subr.bf16.mxu0 %v648_v3  ;;  %v255_v15 = vpack.c.bf16 %v648_v3, %v254_v13  ;;  %v278_v16 = vpack.c.bf16 %v648_v3, %v276_v14 }
  0x1b   : > { %258 = vst [vmem:[#allocation7] sm:$0xf] %v255_v15  ;;  %281 = vst [vmem:[#allocation7 + $0x4] sm:$0xf] %v278_v16 }
  0x1c   : > { %544 = vmatpush3.bf16.msra.mxu0 %v602_v8 }
  0x1d   : > { %545 = vmatprep.subr.bf16.mxu0 %v648_v3 }
  0x20   : > { %546 = vmatpush3.bf16.msra.mxu0 %v603_v12 }
  0x21   : > { %547 = vmatprep.subr.bf16.mxu0 %v648_v3 }
  0x22   : > { %v607_v20 = vld [vmem:[#allocation7] sm:$0xff]  }
  0x24   : > { %548 = vmatpush3.bf16.msra.mxu0 %v604_v17 }
  0x25   : > { %549 = vmatprep.subr.bf16.mxu0 %v648_v3 }
  0x28   : > { %550 = vmatpush3.bf16.msra.mxu0 %v605_v18 }
  0x29   : > { %551 = vmatprep.subr.bf16.mxu0 %v648_v3 }
  0x2c   : > { %552 = vmatpush3.bf16.msra.mxu0 %v606_v19 }
  0x2f   : > { %554 = vmatmul.mubr.bf16.vlgmr.msra.gmra.mxu0 %v607_v20 }
  0xef   : > { %v391_v22 = vpop.f32.mrf.mxu0 }
  0xf0   : > { %v392_v23 = vadd.f32 %v391_v22, %v301_v21 }
  0xf1   : > { %v555_v24 = vpop.f32.mrf.mxu0 }
  0xf2   : > { %399 = vst.msk [vmem:[%s236_s7] sm:$0xff] %vm398_vm2, %v392_v23 }
  0xf3   : > { %v394_v26 = vpop.f32.mrf.mxu0 }
  0xf4   : > { %v395_v27 = vadd.f32 %v394_v26, %v302_v25 }
  0xf5   : > { %v556_v28 = vpop.f32.mrf.mxu0 }
  0xf6   : > { %400 = vst.msk [vmem:[%s236_s7 + $0x8] sm:$0xff] %vm398_vm2, %v395_v27 }
  0xf7 PF: > { %s19_s21 = sadd.s32 1, %s646_s21   ;;  %s776_s17 = smov %s638_s19 }
  0xf8   : > { %p16_p7 = scmp.ge.s32.totalorder %s19_s21, 10   ;;  %s777_s18 = smov %s642_s20 }
  0xf9   : > { %s778_s19 = smov %s781_s3  ;;  %s779_s20 = smov %s785_s22 }
  0xfa   :  { %18 = sbr.rel (!%p16_p7) target bundleno = 3 (0x3), region = 67 }

// kernel: siglip_vision_embeddings.2
= control target key start
LH: loop header
LB: loop body
LE: loop exit
PB: predicated region body
PF: predicated region fallthrough
CT: control target
= control target key end

     0   :  { %s680_s17 = smov 0   ;;  %s682_s18 = smov 0   ;;  %s771_s0 = inlined_call_operand.vmem [shape: bf16[128,32], index: 0, kind: input, shape index: {}]   ;;  %s772_s1 = inlined_call_operand.vmem [shape: f32[64,32], index: 1, kind: input, shape index: {}]   ;;  %s773_s2 = inlined_call_operand.vmem [shape: bf16[2,64,48], index: 2, kind: input, shape index: {}]   ;;  %s774_s3 = inlined_call_operand.<no memory space> [shape: bf16[], index: 3, kind: input, shape index: {}]   ;;  %s775_s4 = inlined_call_operand.vmem [shape: f32[2,64,32], index: 4, kind: output, shape index: {}]  }
   0x1   :  { %v9_v0 = vstv %s774_s3  ;;  %s684_s19 = smov 0   ;;  %s686_s20 = smov 0  }
   0x2   :  { %v678_v1 = vunpack.i.l.bf16 %v9_v0  ;;  %s688_s21 = smov 0  }
   0x3 LB: > { %s28_s3 = sadd.s32 1, %s638_s19  ;;  %s31_s22 = sadd.s32 1, %s642_s20  ;;  %s646_s21 = sphi %s688_s21, %s19_s21   ;;  %s642_s20 = sphi %s686_s20, %s779_s20   ;;  %s638_s19 = sphi %s684_s19, %s778_s19   ;;  %s634_s18 = sphi %s682_s18, %s777_s18   ;;  %s630_s17 = sphi %s680_s17, %s776_s17  }
   0x4   : > { %p29_p0 = scmp.ge.s32.totalorder %s28_s3, 2  ;;  %p507_p1 = scmp.ge.s32.totalorder %s646_s21, 1 }
   0x5   : > { %p175_p2 = scmp.lt.s32.totalorder %s646_s21, 9 }
   0x6   : > { %s781_s3 = smov (%p29_p0, %s28_s3), 0  ;;  %s783_s22 = smov (!%p29_p0, %s31_s22), %s642_s20 }
   0x7   : > { %p176_p3 = pnand %p507_p1, %p175_p2  ;;  %p33_p4 = scmp.ge.s32.totalorder %s783_s22, 4 }
   0x9   : > { %s785_s22 = smov (%p33_p4, %s783_s22), 0  ;;  %179 = sbr.rel (%p176_p3) target bundleno = 247 (0xf7), region = 32 }
   0xe   : > { %v599_v2 = vld [vmem:[%s771_s0 + $0x38] sm:$0xff]   ;;  %v648_v3 = vmov 0.0   ;;  %v600_v4 = vld [vmem:[%s771_s0 + $0x30] sm:$0xff]   ;;  %vm649_vm0 = vmmov 0   ;;  %s508_s27 = sshll.u32 %s634_s18, 1  ;;  %p213_p5 = scmp.lt.s32.totalorder %s630_s17, 1  ;;  %v250_v5 = vlaneseq }
   0xf   : > { %537 = vmatprep.subr.bf16.mxu0 %v648_v3  ;;  %553 = vmatprep.mubr.msk.bf16.mxu0 %vm649_vm0, %v648_v3  ;;  %p215_p6 = scmp.lt.s32.totalorder %s508_s27, 7  ;;  %v601_v6 = vld [vmem:[%s771_s0 + $0x28] sm:$0xff]   ;;  %v602_v8 = vld [vmem:[%s771_s0 + $0x20] sm:$0xff]   ;;  %v603_v12 = vld [vmem:[%s771_s0 + $0x18] sm:$0xff]   ;;  %vm398_vm2 = vcmask 261120  }
  0x10   : > { %538 = vmatpush3.bf16.msra.mxu0 %v599_v2  ;;  %s787_s17 = smov (!%p213_p5, %s630_s17), 1  ;;  %v251_v7 = vand.u32 127, %v250_v5  ;;  %v604_v17 = vld [vmem:[%s771_s0 + $0x10] sm:$0xff]   ;;  %v605_v18 = vld [vmem:[%s771_s0 + $0x8] sm:$0xff]   ;;  %v606_v19 = vld [vmem:[%s771_s0] sm:$0xff]  }
  0x11   : > { %539 = vmatprep.subr.bf16.mxu0 %v648_v3  ;;  %s789_s27 = smov (!%p215_p6, %s508_s27), 7  ;;  %s509_s30 = sshll.u32 %s787_s17, 3 }
  0x12   : > { %s725_s5 = sadd.s32 %s509_s30, %s789_s27  ;;  %vm253_vm1 = vcmp.lt.s32.totalorder %v251_v7, 48  ;;  %s512_s24 = sshll.u32 %s789_s27, 3 }
  0x13   : > { %s510_s6 = sshll.u32 %s725_s5, 2  ;;  %s226_s28 = scalar_lea.vmem %s772_s1, %s512_s24 }
  0x14   : > { %540 = vmatpush3.bf16.msra.mxu0 %v600_v4  ;;  %s220_s11 = scalar_lea.vmem %s773_s2, %s510_s6  ;;  %s515_s29 = sshll.u32 %s725_s5, 3  ;;  %v301_v21 = vld [vmem:[%s226_s28] sm:$0xff]  ;;  %v302_v25 = vld [vmem:[%s226_s28 + $0x8] sm:$0xff] }
  0x15   : > { %541 = vmatprep.subr.bf16.mxu0 %v648_v3  ;;  %v247_v9 = vld [vmem:[%s220_s11] sm:$0xff]   ;;  %s236_s7 = scalar_lea.vmem %s775_s4, %s515_s29 }
  0x16   : > { %v248_v10 = vunpack.c.l.bf16 %v247_v9  ;;  %v270_v11 = vunpack.c.h.bf16 %v247_v9 }
  0x18   : > { %542 = vmatpush3.bf16.msra.mxu0 %v601_v6  ;;  %v254_v13 = vsel %vm253_vm1, %v248_v10, %v678_v1  ;;  %v276_v14 = vsel %vm253_vm1, %v270_v11, %v678_v1 }
  0x19   : > { %543 = vmatprep.subr.bf16.mxu0 %v648_v3  ;;  %v255_v15 = vpack.c.bf16 %v648_v3, %v254_v13  ;;  %v278_v16 = vpack.c.bf16 %v648_v3, %v276_v14 }
  0x1b   : > { %258 = vst [vmem:[#allocation7] sm:$0xf] %v255_v15  ;;  %281 = vst [vmem:[#allocation7 + $0x4] sm:$0xf] %v278_v16 }
  0x1c   : > { %544 = vmatpush3.bf16.msra.mxu0 %v602_v8 }
  0x1d   : > { %545 = vmatprep.subr.bf16.mxu0 %v648_v3 }
  0x20   : > { %546 = vmatpush3.bf16.msra.mxu0 %v603_v12 }
  0x21   : > { %547 = vmatprep.subr.bf16.mxu0 %v648_v3 }
  0x22   : > { %v607_v20 = vld [vmem:[#allocation7] sm:$0xff]  }
  0x24   : > { %548 = vmatpush3.bf16.msra.mxu0 %v604_v17 }
  0x25   : > { %549 = vmatprep.subr.bf16.mxu0 %v648_v3 }
  0x28   : > { %550 = vmatpush3.bf16.msra.mxu0 %v605_v18 }
  0x29   : > { %551 = vmatprep.subr.bf16.mxu0 %v648_v3 }
  0x2c   : > { %552 = vmatpush3.bf16.msra.mxu0 %v606_v19 }
  0x2f   : > { %554 = vmatmul.mubr.bf16.vlgmr.msra.gmra.mxu0 %v607_v20 }
  0xef   : > { %v391_v22 = vpop.f32.mrf.mxu0 }
  0xf0   : > { %v392_v23 = vadd.f32 %v391_v22, %v301_v21 }
  0xf1   : > { %v555_v24 = vpop.f32.mrf.mxu0 }
  0xf2   : > { %399 = vst.msk [vmem:[%s236_s7] sm:$0xff] %vm398_vm2, %v392_v23 }
  0xf3   : > { %v394_v26 = vpop.f32.mrf.mxu0 }
  0xf4   : > { %v395_v27 = vadd.f32 %v394_v26, %v302_v25 }
  0xf5   : > { %v556_v28 = vpop.f32.mrf.mxu0 }
  0xf6   : > { %400 = vst.msk [vmem:[%s236_s7 + $0x8] sm:$0xff] %vm398_vm2, %v395_v27 }
  0xf7 PF: > { %s19_s21 = sadd.s32 1, %s646_s21   ;;  %s776_s17 = smov %s638_s19 }
  0xf8   : > { %p16_p7 = scmp.ge.s32.totalorder %s19_s21, 10   ;;  %s777_s18 = smov %s642_s20 }
  0xf9   : > { %s778_s19 = smov %s781_s3  ;;  %s779_s20 = smov %s785_s22 }
  0xfa   :  { %18 = sbr.rel (!%p16_p7) target bundleno = 3 (0x3), region = 67 }

</bundles_post_ra>
